<compile_context>
chip_gen: v6e
topology: v6e:2x2x1
jax: 0.10.0
libtpu: 0.0.40
codegen_flags: <defaults>
</compile_context>

<pallas_src>
import jax
import jax.numpy as jnp
import numpy as np
from jax.experimental import pallas as pl
from jax.experimental.pallas import tpu as pltpu

ZDIM = 5
H1, H2, H3 = 32, 64, 128
DOUT = 135
LN_EPS = 1e-5
DEFAULT_TILE_B = 4096  # v7x-safe; near-roofline tile on v5e/v6e as well.


def _round_up(x, m):
    return ((x + m - 1) // m) * m


# ----------------------------- kernel ---------------------------------------


def _linear_relu_ln(x, w, p_ref):
    """Linear -> ReLU -> LayerNorm.  p_ref rows: [bias; gamma; beta]."""
    b = p_ref[0:1, :]
    gamma = p_ref[1:2, :]
    beta = p_ref[2:3, :]
    h = jnp.dot(x, w, preferred_element_type=jnp.float32) + b
    h = jnp.maximum(h, 0.0)
    mean = jnp.mean(h, axis=-1, keepdims=True)
    mean_sq = jnp.mean(h * h, axis=-1, keepdims=True)
    var = mean_sq - mean * mean  # single reduction pass over h
    return (h - mean) * jax.lax.rsqrt(var + LN_EPS) * gamma + beta


def generator_kernel(z_ref, eps_ref,
                     w1_ref, p1_ref, w2_ref, p2_ref, w3_ref, p3_ref,
                     wh_ref, bh_ref, out_ref):
    h = _linear_relu_ln(z_ref[...], w1_ref[...], p1_ref)
    h = _linear_relu_ln(h, w2_ref[...], p2_ref)
    h = _linear_relu_ln(h, w3_ref[...], p3_ref)

    # Fused mu/sd heads: one [TILE_B,128] x [128,270] MXU pass, split after.
    heads = jnp.dot(h, wh_ref[...], preferred_element_type=jnp.float32) + bh_ref[...]
    mu = heads[:, :DOUT]
    sd_pre = heads[:, DOUT:]
    # Numerically stable softplus: max(x,0) + log1p(exp(-|x|)).
    sd = jnp.maximum(sd_pre, 0.0) + jnp.log1p(jnp.exp(-jnp.abs(sd_pre)))

    # Reparameterized sample: Normal(mu, sd).rsample()
    out_ref[...] = mu + sd * eps_ref[...]


# ----------------------------- params ---------------------------------------


def init_params(key):
    """Deterministic PyTorch-style init. Weights stored as (in, out)."""
    params = {}

    def linear(k, fan_in, fan_out):
        kw, kb = jax.random.split(k)
        bound = 1.0 / np.sqrt(fan_in)
        w = jax.random.uniform(kw, (fan_in, fan_out), jnp.float32, -bound, bound)
        b = jax.random.uniform(kb, (1, fan_out), jnp.float32, -bound, bound)
        return w, b

    keys = jax.random.split(key, 5)
    params["w1"], params["b1"] = linear(keys[0], ZDIM, H1)
    params["w2"], params["b2"] = linear(keys[1], H1, H2)
    params["w3"], params["b3"] = linear(keys[2], H2, H3)
    params["wmu"], params["bmu"] = linear(keys[3], H3, DOUT)
    params["wsd"], params["bsd"] = linear(keys[4], H3, DOUT)
    # LayerNorm affine params (PyTorch init: gamma=1, beta=0)
    for i, h in ((1, H1), (2, H2), (3, H3)):
        params[f"g{i}"] = jnp.ones((1, h), jnp.float32)
        params[f"be{i}"] = jnp.zeros((1, h), jnp.float32)
    return params


def pack_params(p):
    """Kernel-side packing: per-layer [bias; gamma; beta] and fused mu|sd head."""
    p1 = jnp.concatenate([p["b1"], p["g1"], p["be1"]], axis=0)   # [3, 32]
    p2 = jnp.concatenate([p["b2"], p["g2"], p["be2"]], axis=0)   # [3, 64]
    p3 = jnp.concatenate([p["b3"], p["g3"], p["be3"]], axis=0)   # [3, 128]
    wh = jnp.concatenate([p["wmu"], p["wsd"]], axis=1)           # [128, 270]
    bh = jnp.concatenate([p["bmu"], p["bsd"]], axis=1)           # [1, 270]
    return p["w1"], p1, p["w2"], p2, p["w3"], p3, wh, bh


# ----------------------------- wrapper ---------------------------------------


def generator_forward(nsmpl, params, key, tile_b=None):
    if tile_b is None:
        tile_b = DEFAULT_TILE_B
    # Clamp tile to the (8-aligned) batch and keep it a multiple of 8 sublanes.
    tile_b = max(8, _round_up(min(tile_b, _round_up(nsmpl, 8)), 8))
    padded_n = _round_up(nsmpl, tile_b)
    grid = (padded_n // tile_b,)

    kz, ke = jax.random.split(key)
    z = jax.random.normal(kz, (padded_n, ZDIM), jnp.float32)
    eps = jax.random.normal(ke, (padded_n, DOUT), jnp.float32)

    w1, p1, w2, p2, w3, p3, wh, bh = pack_params(params)
    args = (z, eps, w1, p1, w2, p2, w3, p3, wh, bh)

    def row_spec(feat):
        return pl.BlockSpec((tile_b, feat), lambda i: (i, 0))

    def const_spec(a):
        # Same block every grid step -> DMA'd once, stays VMEM-resident.
        return pl.BlockSpec(a.shape, lambda i: (0, 0))

    in_specs = [row_spec(ZDIM), row_spec(DOUT)] + [const_spec(a) for a in args[2:]]
    out_specs = row_spec(DOUT)

    flops_per_row = 2 * (ZDIM * H1 + H1 * H2 + H2 * H3 + H3 * 2 * DOUT)
    param_bytes = sum(int(a.size) * 4 for a in args[2:])
    cost = pl.CostEstimate(
        flops=int(padded_n * flops_per_row),
        transcendentals=int(padded_n * (2 * DOUT + 3)),  # softplus exp/log + LN rsqrt
        bytes_accessed=int(padded_n * 4 * (ZDIM + 2 * DOUT) + param_bytes),
    )

    out = pl.pallas_call(
        generator_kernel,
        out_shape=jax.ShapeDtypeStruct((padded_n, DOUT), jnp.float32),
        grid=grid,
        in_specs=in_specs,
        out_specs=out_specs,
        compiler_params=pltpu.CompilerParams(
            dimension_semantics=("parallel",),  # shard batch tiles over v7x's 2 TCs
            vmem_limit_bytes=48 * 1024 * 1024,
        ),
        cost_estimate=cost,
    )(*args)

    return out[:nsmpl], z[:nsmpl], eps[:nsmpl]


# ----------------------------- reference -------------------------------------


def _ln_ref(x, gamma, beta):
    mu = jnp.mean(x, axis=-1, keepdims=True)
    var = jnp.mean((x - mu) ** 2, axis=-1, keepdims=True)
    return (x - mu) / jnp.sqrt(var + LN_EPS) * gamma + beta


def generator_reference(z, eps, p):
    """Pure-JAX reference mirroring the PyTorch module."""
    h = jnp.maximum(z @ p["w1"] + p["b1"], 0.0)
    h = _ln_ref(h, p["g1"], p["be1"])
    h = jnp.maximum(h @ p["w2"] + p["b2"], 0.0)
    h = _ln_ref(h, p["g2"], p["be2"])
    h = jnp.maximum(h @ p["w3"] + p["b3"], 0.0)
    h = _ln_ref(h, p["g3"], p["be3"])
    mu = h @ p["wmu"] + p["bmu"]
    sd = jax.nn.softplus(h @ p["wsd"] + p["bsd"])
    return mu + sd * eps


if __name__ == "__main__":
    root = jax.random.PRNGKey(0)
    k_params, k_small, k_med = jax.random.split(root, 3)
    params = init_params(k_params)

    # Case 1: 50 samples with 16-row tiles -> grid=(4,). Exercises the
    # multi-tile pipeline, resident-weight index_maps, and the ragged-batch
    # padding path (50 -> 64 rows, sliced back).
    NSMPL = 50
    out, z, eps = generator_forward(NSMPL, params, k_small, tile_b=16)
    out = jax.block_until_ready(out)
    ref = generator_reference(z, eps, params)
    np.testing.assert_allclose(np.asarray(out), np.asarray(ref), rtol=1e-4, atol=1e-4)
    assert out.shape == (NSMPL, DOUT)

    # Case 2: larger tiles (128 rows/step, grid=(3,)) to exercise the same
    # code path at an MXU-friendlier block size.
    NSMPL2 = 300
    out2, z2, eps2 = generator_forward(NSMPL2, params, k_med, tile_b=128)
    out2 = jax.block_until_ready(out2)
    ref2 = generator_reference(z2, eps2, params)
    np.testing.assert_allclose(np.asarray(out2), np.asarray(ref2), rtol=1e-4, atol=1e-4)
    assert out2.shape == (NSMPL2, DOUT)

    print("KERNEL_OK")
</pallas_src>

<mosaic_0001>
module attributes {stable_mosaic.version = 11 : i64} {
  func.func @generator_kernel(%arg0: i32, %arg1: memref<16x5xf32, #tpu.memory_space<vmem>>, %arg2: memref<16x135xf32, #tpu.memory_space<vmem>>, %arg3: memref<5x32xf32, #tpu.memory_space<vmem>>, %arg4: memref<3x32xf32, #tpu.memory_space<vmem>>, %arg5: memref<32x64xf32, #tpu.memory_space<vmem>>, %arg6: memref<3x64xf32, #tpu.memory_space<vmem>>, %arg7: memref<64x128xf32, #tpu.memory_space<vmem>>, %arg8: memref<3x128xf32, #tpu.memory_space<vmem>>, %arg9: memref<128x270xf32, #tpu.memory_space<vmem>>, %arg10: memref<1x270xf32, #tpu.memory_space<vmem>>, %arg11: memref<16x135xf32, #tpu.memory_space<vmem>>) attributes {dimension_semantics = [#tpu.dimension_semantics<parallel>], iteration_bounds = array<i64: 4>, scalar_prefetch = 0 : i64, scratch_operands = 0 : i64, tpu.core_type = #tpu.core_type<tc>, window_params = [{transform_indices = @transform_0, window_bounds = array<i64: 16, 5>}, {transform_indices = @transform_1, window_bounds = array<i64: 16, 135>}, {pipeline_mode = #tpu.pipeline_mode<synchronous>, transform_indices = @transform_2, window_bounds = array<i64: 5, 32>}, {pipeline_mode = #tpu.pipeline_mode<synchronous>, transform_indices = @transform_3, window_bounds = array<i64: 3, 32>}, {pipeline_mode = #tpu.pipeline_mode<synchronous>, transform_indices = @transform_4, window_bounds = array<i64: 32, 64>}, {pipeline_mode = #tpu.pipeline_mode<synchronous>, transform_indices = @transform_5, window_bounds = array<i64: 3, 64>}, {pipeline_mode = #tpu.pipeline_mode<synchronous>, transform_indices = @transform_6, window_bounds = array<i64: 64, 128>}, {pipeline_mode = #tpu.pipeline_mode<synchronous>, transform_indices = @transform_7, window_bounds = array<i64: 3, 128>}, {pipeline_mode = #tpu.pipeline_mode<synchronous>, transform_indices = @transform_8, window_bounds = array<i64: 128, 270>}, {pipeline_mode = #tpu.pipeline_mode<synchronous>, transform_indices = @transform_9, window_bounds = array<i64: 1, 270>}, {transform_indices = @transform_10, window_bounds = array<i64: 16, 135>}]} {
    %c0 = arith.constant 0 : index
    %c0_0 = arith.constant 0 : index
    %0 = vector.load %arg1[%c0, %c0_0] : memref<16x5xf32, #tpu.memory_space<vmem>>, vector<16x5xf32>
    %c0_1 = arith.constant 0 : index
    %c0_2 = arith.constant 0 : index
    %1 = vector.load %arg3[%c0_1, %c0_2] : memref<5x32xf32, #tpu.memory_space<vmem>>, vector<5x32xf32>
    %c0_3 = arith.constant 0 : index
    %c0_4 = arith.constant 0 : index
    %2 = vector.load %arg4[%c0_3, %c0_4] : memref<3x32xf32, #tpu.memory_space<vmem>>, vector<1x32xf32>
    %c1 = arith.constant 1 : index
    %c0_5 = arith.constant 0 : index
    %3 = vector.load %arg4[%c1, %c0_5] : memref<3x32xf32, #tpu.memory_space<vmem>>, vector<1x32xf32>
    %c2 = arith.constant 2 : index
    %c0_6 = arith.constant 0 : index
    %4 = vector.load %arg4[%c2, %c0_6] : memref<3x32xf32, #tpu.memory_space<vmem>>, vector<1x32xf32>
    %cst = arith.constant dense<0.000000e+00> : vector<16x32xf32>
    %5 = tpu.matmul %0, %1, %cst {dimension_numbers = #tpu.dot_dimension_numbers<[1], [0], [0], [1], [0, 0, 1, 1], [], []>} : vector<16x5xf32>, vector<5x32xf32>, vector<16x32xf32> -> vector<16x32xf32>
    %6 = vector.broadcast %2 : vector<1x32xf32> to vector<16x32xf32>
    %7 = arith.addf %5, %6 : vector<16x32xf32>
    %cst_7 = arith.constant 0.000000e+00 : f32
    %8 = vector.broadcast %cst_7 : f32 to vector<16x32xf32>
    %9 = arith.maximumf %7, %8 : vector<16x32xf32>
    %cst_8 = arith.constant dense<0.000000e+00> : vector<16xf32>
    %10 = vector.multi_reduction <add>, %9, %cst_8 [1] : vector<16x32xf32> to vector<16xf32>
    %11 = vector.shape_cast %10 : vector<16xf32> to vector<16x1xf32>
    %cst_9 = arith.constant 3.200000e+01 : f32
    %12 = vector.broadcast %cst_9 : f32 to vector<16x1xf32>
    %13 = arith.divf %11, %12 : vector<16x1xf32>
    %14 = arith.mulf %9, %9 : vector<16x32xf32>
    %cst_10 = arith.constant dense<0.000000e+00> : vector<16xf32>
    %15 = vector.multi_reduction <add>, %14, %cst_10 [1] : vector<16x32xf32> to vector<16xf32>
    %16 = vector.shape_cast %15 : vector<16xf32> to vector<16x1xf32>
    %cst_11 = arith.constant 3.200000e+01 : f32
    %17 = vector.broadcast %cst_11 : f32 to vector<16x1xf32>
    %18 = arith.divf %16, %17 : vector<16x1xf32>
    %19 = arith.mulf %13, %13 : vector<16x1xf32>
    %20 = arith.subf %18, %19 : vector<16x1xf32>
    %21 = vector.broadcast %13 : vector<16x1xf32> to vector<16x32xf32>
    %22 = arith.subf %9, %21 : vector<16x32xf32>
    %cst_12 = arith.constant 9.99999974E-6 : f32
    %23 = vector.broadcast %cst_12 : f32 to vector<16x1xf32>
    %24 = arith.addf %20, %23 : vector<16x1xf32>
    %25 = math.rsqrt %24 : vector<16x1xf32>
    %26 = vector.broadcast %25 : vector<16x1xf32> to vector<16x32xf32>
    %27 = arith.mulf %22, %26 : vector<16x32xf32>
    %28 = vector.broadcast %3 : vector<1x32xf32> to vector<16x32xf32>
    %29 = arith.mulf %27, %28 : vector<16x32xf32>
    %30 = vector.broadcast %4 : vector<1x32xf32> to vector<16x32xf32>
    %31 = arith.addf %29, %30 : vector<16x32xf32>
    %c0_13 = arith.constant 0 : index
    %c0_14 = arith.constant 0 : index
    %32 = vector.load %arg5[%c0_13, %c0_14] : memref<32x64xf32, #tpu.memory_space<vmem>>, vector<32x64xf32>
    %c0_15 = arith.constant 0 : index
    %c0_16 = arith.constant 0 : index
    %33 = vector.load %arg6[%c0_15, %c0_16] : memref<3x64xf32, #tpu.memory_space<vmem>>, vector<1x64xf32>
    %c1_17 = arith.constant 1 : index
    %c0_18 = arith.constant 0 : index
    %34 = vector.load %arg6[%c1_17, %c0_18] : memref<3x64xf32, #tpu.memory_space<vmem>>, vector<1x64xf32>
    %c2_19 = arith.constant 2 : index
    %c0_20 = arith.constant 0 : index
    %35 = vector.load %arg6[%c2_19, %c0_20] : memref<3x64xf32, #tpu.memory_space<vmem>>, vector<1x64xf32>
    %cst_21 = arith.constant dense<0.000000e+00> : vector<16x64xf32>
    %36 = tpu.matmul %31, %32, %cst_21 {dimension_numbers = #tpu.dot_dimension_numbers<[1], [0], [0], [1], [0, 0, 1, 1], [], []>} : vector<16x32xf32>, vector<32x64xf32>, vector<16x64xf32> -> vector<16x64xf32>
    %37 = vector.broadcast %33 : vector<1x64xf32> to vector<16x64xf32>
    %38 = arith.addf %36, %37 : vector<16x64xf32>
    %cst_22 = arith.constant 0.000000e+00 : f32
    %39 = vector.broadcast %cst_22 : f32 to vector<16x64xf32>
    %40 = arith.maximumf %38, %39 : vector<16x64xf32>
    %cst_23 = arith.constant dense<0.000000e+00> : vector<16xf32>
    %41 = vector.multi_reduction <add>, %40, %cst_23 [1] : vector<16x64xf32> to vector<16xf32>
    %42 = vector.shape_cast %41 : vector<16xf32> to vector<16x1xf32>
    %cst_24 = arith.constant 6.400000e+01 : f32
    %43 = vector.broadcast %cst_24 : f32 to vector<16x1xf32>
    %44 = arith.divf %42, %43 : vector<16x1xf32>
    %45 = arith.mulf %40, %40 : vector<16x64xf32>
    %cst_25 = arith.constant dense<0.000000e+00> : vector<16xf32>
    %46 = vector.multi_reduction <add>, %45, %cst_25 [1] : vector<16x64xf32> to vector<16xf32>
    %47 = vector.shape_cast %46 : vector<16xf32> to vector<16x1xf32>
    %cst_26 = arith.constant 6.400000e+01 : f32
    %48 = vector.broadcast %cst_26 : f32 to vector<16x1xf32>
    %49 = arith.divf %47, %48 : vector<16x1xf32>
    %50 = arith.mulf %44, %44 : vector<16x1xf32>
    %51 = arith.subf %49, %50 : vector<16x1xf32>
    %52 = vector.broadcast %44 : vector<16x1xf32> to vector<16x64xf32>
    %53 = arith.subf %40, %52 : vector<16x64xf32>
    %cst_27 = arith.constant 9.99999974E-6 : f32
    %54 = vector.broadcast %cst_27 : f32 to vector<16x1xf32>
    %55 = arith.addf %51, %54 : vector<16x1xf32>
    %56 = math.rsqrt %55 : vector<16x1xf32>
    %57 = vector.broadcast %56 : vector<16x1xf32> to vector<16x64xf32>
    %58 = arith.mulf %53, %57 : vector<16x64xf32>
    %59 = vector.broadcast %34 : vector<1x64xf32> to vector<16x64xf32>
    %60 = arith.mulf %58, %59 : vector<16x64xf32>
    %61 = vector.broadcast %35 : vector<1x64xf32> to vector<16x64xf32>
    %62 = arith.addf %60, %61 : vector<16x64xf32>
    %c0_28 = arith.constant 0 : index
    %c0_29 = arith.constant 0 : index
    %63 = vector.load %arg7[%c0_28, %c0_29] : memref<64x128xf32, #tpu.memory_space<vmem>>, vector<64x128xf32>
    %c0_30 = arith.constant 0 : index
    %c0_31 = arith.constant 0 : index
    %64 = vector.load %arg8[%c0_30, %c0_31] : memref<3x128xf32, #tpu.memory_space<vmem>>, vector<1x128xf32>
    %c1_32 = arith.constant 1 : index
    %c0_33 = arith.constant 0 : index
    %65 = vector.load %arg8[%c1_32, %c0_33] : memref<3x128xf32, #tpu.memory_space<vmem>>, vector<1x128xf32>
    %c2_34 = arith.constant 2 : index
    %c0_35 = arith.constant 0 : index
    %66 = vector.load %arg8[%c2_34, %c0_35] : memref<3x128xf32, #tpu.memory_space<vmem>>, vector<1x128xf32>
    %cst_36 = arith.constant dense<0.000000e+00> : vector<16x128xf32>
    %67 = tpu.matmul %62, %63, %cst_36 {dimension_numbers = #tpu.dot_dimension_numbers<[1], [0], [0], [1], [0, 0, 1, 1], [], []>} : vector<16x64xf32>, vector<64x128xf32>, vector<16x128xf32> -> vector<16x128xf32>
    %68 = vector.broadcast %64 : vector<1x128xf32> to vector<16x128xf32>
    %69 = arith.addf %67, %68 : vector<16x128xf32>
    %cst_37 = arith.constant 0.000000e+00 : f32
    %70 = vector.broadcast %cst_37 : f32 to vector<16x128xf32>
    %71 = arith.maximumf %69, %70 : vector<16x128xf32>
    %cst_38 = arith.constant dense<0.000000e+00> : vector<16xf32>
    %72 = vector.multi_reduction <add>, %71, %cst_38 [1] : vector<16x128xf32> to vector<16xf32>
    %73 = vector.shape_cast %72 : vector<16xf32> to vector<16x1xf32>
    %cst_39 = arith.constant 1.280000e+02 : f32
    %74 = vector.broadcast %cst_39 : f32 to vector<16x1xf32>
    %75 = arith.divf %73, %74 : vector<16x1xf32>
    %76 = arith.mulf %71, %71 : vector<16x128xf32>
    %cst_40 = arith.constant dense<0.000000e+00> : vector<16xf32>
    %77 = vector.multi_reduction <add>, %76, %cst_40 [1] : vector<16x128xf32> to vector<16xf32>
    %78 = vector.shape_cast %77 : vector<16xf32> to vector<16x1xf32>
    %cst_41 = arith.constant 1.280000e+02 : f32
    %79 = vector.broadcast %cst_41 : f32 to vector<16x1xf32>
    %80 = arith.divf %78, %79 : vector<16x1xf32>
    %81 = arith.mulf %75, %75 : vector<16x1xf32>
    %82 = arith.subf %80, %81 : vector<16x1xf32>
    %83 = vector.broadcast %75 : vector<16x1xf32> to vector<16x128xf32>
    %84 = arith.subf %71, %83 : vector<16x128xf32>
    %cst_42 = arith.constant 9.99999974E-6 : f32
    %85 = vector.broadcast %cst_42 : f32 to vector<16x1xf32>
    %86 = arith.addf %82, %85 : vector<16x1xf32>
    %87 = math.rsqrt %86 : vector<16x1xf32>
    %88 = vector.broadcast %87 : vector<16x1xf32> to vector<16x128xf32>
    %89 = arith.mulf %84, %88 : vector<16x128xf32>
    %90 = vector.broadcast %65 : vector<1x128xf32> to vector<16x128xf32>
    %91 = arith.mulf %89, %90 : vector<16x128xf32>
    %92 = vector.broadcast %66 : vector<1x128xf32> to vector<16x128xf32>
    %93 = arith.addf %91, %92 : vector<16x128xf32>
    %c0_43 = arith.constant 0 : index
    %c0_44 = arith.constant 0 : index
    %94 = vector.load %arg9[%c0_43, %c0_44] : memref<128x270xf32, #tpu.memory_space<vmem>>, vector<128x270xf32>
    %cst_45 = arith.constant dense<0.000000e+00> : vector<16x270xf32>
    %95 = tpu.matmul %93, %94, %cst_45 {dimension_numbers = #tpu.dot_dimension_numbers<[1], [0], [0], [1], [0, 0, 1, 1], [], []>} : vector<16x128xf32>, vector<128x270xf32>, vector<16x270xf32> -> vector<16x270xf32>
    %c0_46 = arith.constant 0 : index
    %c0_47 = arith.constant 0 : index
    %96 = vector.load %arg10[%c0_46, %c0_47] : memref<1x270xf32, #tpu.memory_space<vmem>>, vector<1x270xf32>
    %97 = vector.broadcast %96 : vector<1x270xf32> to vector<16x270xf32>
    %98 = arith.addf %95, %97 : vector<16x270xf32>
    %99 = vector.extract_strided_slice %98 {offsets = [0, 0], sizes = [16, 135], strides = [1, 1]} : vector<16x270xf32> to vector<16x135xf32>
    %100 = vector.extract_strided_slice %98 {offsets = [0, 135], sizes = [16, 135], strides = [1, 1]} : vector<16x270xf32> to vector<16x135xf32>
    %cst_48 = arith.constant 0.000000e+00 : f32
    %101 = vector.broadcast %cst_48 : f32 to vector<16x135xf32>
    %102 = arith.maximumf %100, %101 : vector<16x135xf32>
    %103 = math.absf %100 : vector<16x135xf32>
    %cst_49 = arith.constant 0.000000e+00 : f32
    %104 = vector.broadcast %cst_49 : f32 to vector<16x135xf32>
    %105 = arith.subf %104, %103 : vector<16x135xf32>
    %106 = math.exp %105 : vector<16x135xf32>
    %107 = math.log1p %106 : vector<16x135xf32>
    %108 = arith.addf %102, %107 : vector<16x135xf32>
    %c0_50 = arith.constant 0 : index
    %c0_51 = arith.constant 0 : index
    %109 = vector.load %arg2[%c0_50, %c0_51] : memref<16x135xf32, #tpu.memory_space<vmem>>, vector<16x135xf32>
    %110 = arith.mulf %108, %109 : vector<16x135xf32>
    %111 = arith.addf %99, %110 : vector<16x135xf32>
    %c0_52 = arith.constant 0 : index
    %c0_53 = arith.constant 0 : index
    %112 = vector.load %arg11[%c0_52, %c0_53] : memref<16x135xf32, #tpu.memory_space<vmem>>, vector<16x135xf32>
    tpu.vector_store %arg11[%c0_52, %c0_53], %111 {strides = array<i32>} : memref<16x135xf32, #tpu.memory_space<vmem>>, vector<16x135xf32>,
    return
  }
  func.func @transform_0(%arg0: i32) -> (i32, i32) {
    %c0_i32 = arith.constant 0 : i32
    %c0_i32_0 = arith.constant 0 : i32
    return %arg0, %c0_i32 : i32, i32
  }
  func.func @transform_1(%arg0: i32) -> (i32, i32) {
    %c0_i32 = arith.constant 0 : i32
    %c0_i32_0 = arith.constant 0 : i32
    return %arg0, %c0_i32 : i32, i32
  }
  func.func @transform_2(%arg0: i32) -> (i32, i32) {
    %c0_i32 = arith.constant 0 : i32
    %c0_i32_0 = arith.constant 0 : i32
    %c0_i32_1 = arith.constant 0 : i32
    return %c0_i32, %c0_i32_0 : i32, i32
  }
  func.func @transform_3(%arg0: i32) -> (i32, i32) {
    %c0_i32 = arith.constant 0 : i32
    %c0_i32_0 = arith.constant 0 : i32
    %c0_i32_1 = arith.constant 0 : i32
    return %c0_i32, %c0_i32_0 : i32, i32
  }
  func.func @transform_4(%arg0: i32) -> (i32, i32) {
    %c0_i32 = arith.constant 0 : i32
    %c0_i32_0 = arith.constant 0 : i32
    %c0_i32_1 = arith.constant 0 : i32
    return %c0_i32, %c0_i32_0 : i32, i32
  }
  func.func @transform_5(%arg0: i32) -> (i32, i32) {
    %c0_i32 = arith.constant 0 : i32
    %c0_i32_0 = arith.constant 0 : i32
    %c0_i32_1 = arith.constant 0 : i32
    return %c0_i32, %c0_i32_0 : i32, i32
  }
  func.func @transform_6(%arg0: i32) -> (i32, i32) {
    %c0_i32 = arith.constant 0 : i32
    %c0_i32_0 = arith.constant 0 : i32
    %c0_i32_1 = arith.constant 0 : i32
    return %c0_i32, %c0_i32_0 : i32, i32
  }
  func.func @transform_7(%arg0: i32) -> (i32, i32) {
    %c0_i32 = arith.constant 0 : i32
    %c0_i32_0 = arith.constant 0 : i32
    %c0_i32_1 = arith.constant 0 : i32
    return %c0_i32, %c0_i32_0 : i32, i32
  }
  func.func @transform_8(%arg0: i32) -> (i32, i32) {
    %c0_i32 = arith.constant 0 : i32
    %c0_i32_0 = arith.constant 0 : i32
    %c0_i32_1 = arith.constant 0 : i32
    return %c0_i32, %c0_i32_0 : i32, i32
  }
  func.func @transform_9(%arg0: i32) -> (i32, i32) {
    %c0_i32 = arith.constant 0 : i32
    %c0_i32_0 = arith.constant 0 : i32
    %c0_i32_1 = arith.constant 0 : i32
    return %c0_i32, %c0_i32_0 : i32, i32
  }
  func.func @transform_10(%arg0: i32) -> (i32, i32) {
    %c0_i32 = arith.constant 0 : i32
    %c0_i32_0 = arith.constant 0 : i32
    return %arg0, %c0_i32 : i32, i32
  }
}

</mosaic_0001>

<bundles_post_ra>
// kernel: tpu_custom_call.1
= control target key start
LH: loop header
LB: loop body
LE: loop exit
PB: predicated region body
PF: predicated region fallthrough
CT: control target
= control target key end

     0   :  { %15 = vsyncpa [#allocation3], 0  ;;  %s1943_s0 = inlined_call_operand.vmem [shape: f32[64,5], index: 0, kind: input, shape index: {}]   ;;  %s1944_s1 = inlined_call_operand.vmem [shape: f32[64,135], index: 1, kind: input, shape index: {}]   ;;  %s1945_s2 = inlined_call_operand.vmem [shape: f32[5,32], index: 2, kind: input, shape index: {}]   ;;  %s1946_s3 = inlined_call_operand.vmem [shape: f32[3,32], index: 3, kind: input, shape index: {}]   ;;  %s1947_s4 = inlined_call_operand.vmem [shape: f32[32,64], index: 4, kind: input, shape index: {}]   ;;  %s1948_s5 = inlined_call_operand.vmem [shape: f32[3,64], index: 5, kind: input, shape index: {}]   ;;  %s1949_s6 = inlined_call_operand.vmem [shape: f32[64,128], index: 6, kind: input, shape index: {}]   ;;  %s1950_s7 = inlined_call_operand.vmem [shape: f32[3,128], index: 7, kind: input, shape index: {}]   ;;  %s1951_s8 = inlined_call_operand.vmem [shape: f32[128,270], index: 8, kind: input, shape index: {}]   ;;  %s1952_s9 = inlined_call_operand.vmem [shape: f32[1,270], index: 9, kind: input, shape index: {}]   ;;  %s1953_s10 = inlined_call_operand.hbm [shape: f32[64,135], index: 10, kind: output, shape index: {}]  }
   0x1   :  { %17 = vsyncpa [#allocation3 + $0x1], 0  ;;  %s1560_s13 = smov 0   ;;  %s1562_s14 = smov 0  }
   0x2   :  { %s1564_s15 = smov 0   ;;  %s1566_s16 = smov 0  }
   0x3 LB: > { %s1581_s17 = sadd.s32 4294967295, %s1497_s16   ;;  %s1223_s18 = sadd.s32 4294967294, %s1497_s16   ;;  %s1497_s16 = sphi %s1566_s16, %s1959_s16   ;;  %s1493_s15 = sphi %s1564_s15, %s1958_s15   ;;  %s1489_s14 = sphi %s1562_s14, %s1957_s14   ;;  %s1485_s13 = sphi %s1560_s13, %s1956_s13  }
   0x4   : > { %s1585_s19 = sadd.s32 1, %s1497_s16   ;;  %s250_s20 = sadd.s32 1, %s1493_s15 }
   0x5   : > { %s247_s21 = ssub.s32 %s1497_s16, %s1585_s19  ;;  %p260_p0 = scmp.ne.s32.totalorder %s1493_s15, %s1489_s14 }
   0x6   : > { %p248_p1 = scmp.eq.s32.totalorder %s247_s21, 0  ;;  %p261_p2 = scmp.eq.s32.totalorder %s1581_s17, 3 }
   0x7   : > { %p266_p3 = scmp.ne.s32.totalorder %s1489_s14, %s1485_s13  ;;  %p267_p4 = scmp.eq.s32.totalorder %s1223_s18, 3 }
   0x8   : > { %s1596_s22 = scalar_select %p248_p1, %s1493_s15, %s250_s20  }
   0x9   : > { %p1598_p5 = por %p261_p2, %p260_p0  ;;  %p1602_p6 = por %p267_p4, %p266_p3 }
   0xa   : > { %p1226_p7 = scmp.ge.s32.totalorder %s1497_s16, 1  ;;  %p328_p8 = scmp.lt.s32.totalorder %s1497_s16, 5 }
   0xc   : > { %p329_p9 = pnand %p1226_p7, %p328_p8 }
   0xd   : > { %s1228_s27 = sshll.u32 (!%p329_p9), %s1581_s17, 1  ;;  %s1500_s30 = smov (!%p329_p9), 7  }
   0xe   : > { %332 = sbr.rel (%p329_p9) target bundleno = 1509 (0x5e5), region = 60  ;;  %p373_p10 = scmp.lt.s32.totalorder (!%p329_p9), %s1228_s27, 7 }
   0xf   : > { %s369_s26 = sand.u32 (!%p329_p9), 1, %s1489_s14   ;;  %s1502_s21 = smov (!%p329_p9), [#allocation2]  }
  0x13   : > { %v388_v0 = vld [vmem:[%s1945_s2] sm:$0x1f]  ;;  %vm403_vm0 = vcmask 1044480   ;;  %s1961_s27 = smov (!%p373_p10, %s1228_s27), 7  ;;  %vm396_vm1 = vcmask 39936   ;;  %vm484_vm2 = vcmask 261120  }
  0x14   : > { %1295 = vmatprep.subr.msk.mxu1 %vm403_vm0, %v388_v0  ;;  %s1229_s28 = sshll.u32 %s1961_s27, 3  ;;  %v1233_v3 = vld [vmem:[%s1946_s3] ss:$0 sm:$0xff]  ;;  %v531_v16 = vld [vmem:[%s1947_s4 + $0x18] sm:$0xff]  ;;  %v530_v17 = vld [vmem:[%s1947_s4 + $0x10] sm:$0xff]  ;;  %vm622_vm3 = vcmask 523264  }
  0x15   : > { %1296 = vmatpush3.msk.msra.mxu1 %vm403_vm0, %v388_v0  ;;  %s376_s11 = scalar_lea.vmem %s1943_s0, %s1229_s28  ;;  %v529_v18 = vld [vmem:[%s1947_s4 + $0x8] sm:$0xff]  ;;  %v528_v19 = vld [vmem:[%s1947_s4] sm:$0xff]  ;;  %v673_v59 = vld [vmem:[%s1949_s6 + $0x38] sm:$0xff]  ;;  %s1255_s25 = sshll.u32 %s1961_s27, 4  ;;  %vm1096_vm5 = vcmask 56320   ;;  %vm1119_vm9 = vcmask 990208  }
  0x16   : > { %v386_v1 = vld [vmem:[%s376_s11] sm:$0xff]  ;;  %v387_v2 = vld [vmem:[%s376_s11 + $0x8] sm:$0xff]  ;;  %1300 = vmatprep.subr.mxu1 %v531_v16  ;;  %v672_v60 = vld [vmem:[%s1949_s6 + $0x30] sm:$0xff]  ;;  %1311 = vmatprep.subr.mxu0 %v673_v59  ;;  %s383_s29 = scalar_lea.vmem %s1944_s1, %s1255_s25  ;;  %s1501_s25 = smov 121  }
  0x17   : > { %1297 = vmatprep.mubr.msk.f32.mxu1 %vm396_vm1, %v386_v1  ;;  %v1237_v36 = vld [vmem:[%s1946_s3 + $0x1] ss:$0 sm:$0xff]  ;;  %v1238_v38 = vld [vmem:[%s1946_s3 + $0x2] ss:$0 sm:$0xff]  ;;  %v1239_v46 = vld [vmem:[%s1948_s5] ss:$0 sm:$0xff]  ;;  %1312 = vmatpush3.msra.mxu0 %v673_v59 }
  0x18   : > { %1298 = vmatmul.mubr.msk.f32.vlgmr.msra.gmra.mxu1 %vm396_vm1, %v387_v2  ;;  %v671_v61 = vld [vmem:[%s1949_s6 + $0x28] sm:$0xff]  ;;  %1313 = vmatprep.subr.mxu0 %v672_v60  ;;  %v670_v62 = vld [vmem:[%s1949_s6 + $0x20] sm:$0xff]  ;;  %v669_v63 = vld [vmem:[%s1949_s6 + $0x18] sm:$0xff]  ;;  %s1227_s28 = sshll.u32 %s369_s26, 5  ;;  %s1257_s27 = sshll.u32 %s1581_s17, 9 }
  0x19   : > { %1301 = vmatpush3.msra.mxu1 %v531_v16  ;;  %1314 = vmatpush3.msra.mxu0 %v672_v60  ;;  %v668_v0 = vld [vmem:[%s1949_s6 + $0x10] sm:$0xff]  ;;  %v667_v1 = vld [vmem:[%s1949_s6 + $0x8] sm:$0xff]  ;;  %v666_v2 = vld [vmem:[%s1949_s6] sm:$0xff]  ;;  %s1900_s18 = scalar_lea.hbm %s1953_s10, %s1257_s27  ;;  %s1903_s17 = scalar_lea.sflag [#allocation3], %s369_s26 }
  0x1a   : > { %1302 = vmatprep.subr.mxu1 %v530_v17  ;;  %1315 = vmatprep.subr.mxu0 %v671_v61  ;;  %v827_v59 = vld [vmem:[%s1951_s8 + $0xc0] sm:$0xff]  ;;  %v825_v60 = vld [vmem:[%s1951_s8 + $0xb0] sm:$0xff] }
  0x1b   : > { %1303 = vmatpush3.msra.mxu1 %v530_v17  ;;  %1316 = vmatpush3.msra.mxu0 %v671_v61  ;;  %v832_v61 = vld [vmem:[%s1951_s8 + $0xe8] sm:$0xff] }
  0x1c   : > { %1304 = vmatprep.subr.mxu1 %v529_v18  ;;  %1317 = vmatprep.subr.mxu0 %v670_v62 }
  0x1d   : > { %1305 = vmatpush3.msra.mxu1 %v529_v18  ;;  %1318 = vmatpush3.msra.mxu0 %v670_v62  ;;  %v824_v62 = vld [vmem:[%s1951_s8 + $0xa8] sm:$0xff] }
  0x1e   : > { %1306 = vmatprep.subr.mxu1 %v528_v19  ;;  %1319 = vmatprep.subr.mxu0 %v669_v63 }
  0x1f   : > { %1307 = vmatpush3.msra.mxu1 %v528_v19  ;;  %1320 = vmatpush3.msra.mxu0 %v669_v63  ;;  %v822_v63 = vld [vmem:[%s1951_s8 + $0x98] sm:$0xff] }
  0x20   : > { %1321 = vmatprep.subr.mxu0 %v668_v0 }
  0x21   : > { %1322 = vmatpush3.msra.mxu0 %v668_v0  ;;  %v829_v0 = vld [vmem:[%s1951_s8 + $0xd0] sm:$0xff] }
  0x22   : > { %1323 = vmatprep.subr.mxu0 %v667_v1 }
  0x23   : > { %1324 = vmatpush3.msra.mxu0 %v667_v1  ;;  %v821_v1 = vld [vmem:[%s1951_s8 + $0x90] sm:$0xff] }
  0x24   : > { %1325 = vmatprep.subr.mxu0 %v666_v2 }
  0x25   : > { %1326 = vmatpush3.msra.mxu0 %v666_v2  ;;  %v819_v2 = vld [vmem:[%s1951_s8 + $0x80] sm:$0xff] }
  0xd8   : > { %v1299_v4 = vpop.f32.mrf.mxu1 }
  0xd9   : > { %v479_v5 = vadd.f32 %v1299_v4, %v1233_v3 }
  0xda   : > { %v473_v6 = vpop.f32.mrf.mxu1 }
  0xdb   : > { %v474_v7 = vadd.f32 %v1233_v3, %v473_v6  ;;  %v483_v8 = vmax.f32 %v479_v5, 0.0 }
  0xdd   : > { %v482_v9 = vmax.f32 %v474_v7, 0.0  ;;  %v495_v13 = vmul.f32 %v483_v8, %v483_v8  ;;  %v488_v14 = vsel %vm484_vm2, %v483_v8, 0.0 }
  0xdf   : > { %v485_v10 = vsel %vm484_vm2, %v482_v9, 0.0  ;;  %v494_v11 = vmul.f32 %v482_v9, %v482_v9  ;;  %v499_v15 = vsel %vm484_vm2, %v495_v13, 0.0 }
  0xe0   : > { %486 = vadd.xlane.f32.xlu0 %v485_v10 }
  0xe1   : > { %v496_v12 = vsel %vm484_vm2, %v494_v11, 0.0 }
  0xe2   : > { %497 = vadd.xlane.f32.xlu1 %v496_v12 }
  0xe4   : > { %489 = vadd.xlane.f32.xlu0 %v488_v14 }
  0xe6   : > { %500 = vadd.xlane.f32.xlu1 %v499_v15 }
 0x169   : > { %v487_v20 = vpop.xlane.xlu0 %486 }
 0x16a   : > { %v492_v21 = vmul.f32 0.03125, %v487_v20  ;;  %v1242_v20 = vld [vmem:[%s1948_s5 + $0x1] ss:$0 sm:$0xff] }
 0x16b   : > { %v498_v22 = vpop.xlane.xlu1 %497 }
 0x16c   : > { %v504_v23 = vmul.f32 %v492_v21, %v492_v21  ;;  %v502_v24 = vmul.f32 0.03125, %v498_v22  ;;  %v508_v34 = vsub.f32 %v482_v9, %v492_v21 }
 0x16d   : > { %v490_v25 = vpop.xlane.xlu0 %489 }
 0x16e   : > { %v506_v26 = vsub.f32 %v502_v24, %v504_v23  ;;  %v493_v27 = vmul.f32 0.03125, %v490_v25  ;;  %v1243_v25 = vld [vmem:[%s1948_s5 + $0x2] ss:$0 sm:$0xff] }
 0x16f   : > { %v501_v28 = vpop.xlane.xlu1 %500 }
 0x170   : > { %v510_v29 = vadd.f32 1e-05, %v506_v26  ;;  %v505_v30 = vmul.f32 %v493_v27, %v493_v27  ;;  %v503_v31 = vmul.f32 0.03125, %v501_v28  ;;  %v509_v39 = vsub.f32 %v483_v8, %v493_v27 }
 0x172   : > { %1409 = vrsqrt.f32 %v510_v29  ;;  %v507_v32 = vsub.f32 %v503_v31, %v505_v30  ;;  %v849_v29 = vld [vmem:[%s1951_s8 + $0x170] sm:$0xff]  ;;  %v848_v30 = vld [vmem:[%s1951_s8 + $0x168] sm:$0xff]  ;;  %v846_v31 = vld [vmem:[%s1951_s8 + $0x158] sm:$0xff] }
 0x173   : > { %868 = vmatprep.subr.mxu1 %v849_v29 }
 0x174   : > { %v511_v33 = vadd.f32 1e-05, %v507_v32  ;;  %v845_v32 = vld [vmem:[%s1951_s8 + $0x150] sm:$0xff] }
 0x176   : > { %1411 = vrsqrt.f32 %v511_v33 }
 0x17f   : > { %v1410_v35 = vpop.eup %1409 }
 0x180   : > { %v514_v37 = vmul.f32 %v1410_v35, %v508_v34  ;;  %v1244_v34 = vld [vmem:[%s1950_s7] ss:$0 sm:$0xff] }
 0x182   : > { %v520_v40 = vmul.f32 %v1237_v36, %v514_v37 }
 0x183   : > { %v1412_v41 = vpop.eup %1411 }
 0x184   : > { %v515_v42 = vmul.f32 %v1412_v41, %v509_v39  ;;  %v526_v43 = vadd.f32 %v1238_v38, %v520_v40 }
 0x186   : > { %v521_v44 = vmul.f32 %v1237_v36, %v515_v42  ;;  %1308 = vmatprep.mubr.msk.f32.mxu1 %vm484_vm2, %v526_v43  ;;  %v843_v42 = vld [vmem:[%s1951_s8 + $0x140] sm:$0xff]  ;;  %v850_v43 = vld [vmem:[%s1951_s8 + $0x178] sm:$0xff] }
 0x187   : > { %1330 = vmatprep.subr.mxu0 %v850_v43 }
 0x188   : > { %v527_v45 = vadd.f32 %v1238_v38, %v521_v44  ;;  %v842_v44 = vld [vmem:[%s1951_s8 + $0x138] sm:$0xff] }
 0x18a   : > { %1309 = vmatmul.mubr.msk.f32.vlgmr.msra.gmra.mxu1 %vm484_vm2, %v527_v45  ;;  %v840_v45 = vld [vmem:[%s1951_s8 + $0x128] sm:$0xff] }
 0x18b   : > { %869 = vmatpush1.msra.mxu1 %v848_v30 }
 0x18c   : > { %870 = vmatprep.subr.mxu1 %v846_v31 }
 0x18d   : > { %871 = vmatpush1.msra.mxu1 %v845_v32 }
 0x18e   : > { %872 = vmatprep.subr.mxu1 %v843_v42 }
 0x18f   : > { %873 = vmatpush1.msra.mxu1 %v842_v44 }
 0x190   : > { %874 = vmatprep.subr.mxu1 %v840_v45  ;;  %v1247_v45 = vld [vmem:[%s1950_s7 + $0x1] ss:$0 sm:$0xff] }
 0x24a   : > { %v1310_v47 = vpop.f32.mrf.mxu1 }
 0x24b   : > { %v617_v48 = vadd.f32 %v1310_v47, %v1239_v46  ;;  %v839_v47 = vld [vmem:[%s1951_s8 + $0x120] sm:$0xff] }
 0x24c   : > { %v611_v49 = vpop.f32.mrf.mxu1  ;;  %875 = vmatpush1.msra.mxu1 %v839_v47  ;;  %v1248_v47 = vld [vmem:[%s1950_s7 + $0x2] ss:$0 sm:$0xff] }
 0x24d   : > { %v621_v50 = vmax.f32 %v617_v48, 0.0  ;;  %v612_v51 = vadd.f32 %v1239_v46, %v611_v49  ;;  %v847_v46 = vld [vmem:[%s1951_s8 + $0x160] sm:$0xff]  ;;  %v837_v48 = vld [vmem:[%s1951_s8 + $0x110] sm:$0xff]  ;;  %v844_v49 = vld [vmem:[%s1951_s8 + $0x148] sm:$0xff] }
 0x24e   : > { %876 = vmatprep.subr.mxu1 %v837_v48 }
 0x24f   : > { %v620_v52 = vmax.f32 %v612_v51, 0.0  ;;  %v626_v53 = vsel %vm622_vm3, %v621_v50, 0.0  ;;  %v633_v54 = vmul.f32 %v621_v50, %v621_v50  ;;  %v834_v51 = vld [vmem:[%s1951_s8 + $0xf8] sm:$0xff] }
 0x250   : > { %627 = vadd.xlane.f32.xlu1 %v626_v53  ;;  %v833_v53 = vld [vmem:[%s1951_s8 + $0xf0] sm:$0xff] }
 0x251   : > { %v623_v55 = vsel %vm622_vm3, %v620_v52, 0.0  ;;  %v632_v56 = vmul.f32 %v620_v52, %v620_v52  ;;  %v637_v57 = vsel %vm622_vm3, %v633_v54, 0.0  ;;  %v831_v54 = vld [vmem:[%s1951_s8 + $0xe0] sm:$0xff] }
 0x252   : > { %624 = vadd.xlane.f32.xlu0 %v623_v55  ;;  %v838_v55 = vld [vmem:[%s1951_s8 + $0x118] sm:$0xff] }
 0x253   : > { %v634_v58 = vsel %vm622_vm3, %v632_v56, 0.0  ;;  %v830_v56 = vld [vmem:[%s1951_s8 + $0xd8] sm:$0xff] }
 0x254   : > { %638 = vadd.xlane.f32.xlu1 %v637_v57  ;;  %v828_v57 = vld [vmem:[%s1951_s8 + $0xc8] sm:$0xff] }
 0x256   : > { %635 = vadd.xlane.f32.xlu0 %v634_v58  ;;  %v835_v58 = vld [vmem:[%s1951_s8 + $0x100] sm:$0xff] }
 0x2d9   : > { %v628_v3 = vpop.xlane.xlu1 %627 }
 0x2da   : > { %v631_v4 = vmul.f32 0.015625, %v628_v3  ;;  %v826_v3 = vld [vmem:[%s1951_s8 + $0xb8] sm:$0xff] }
 0x2db   : > { %v625_v5 = vpop.xlane.xlu0 %624 }
 0x2dc   : > { %v630_v6 = vmul.f32 0.015625, %v625_v5  ;;  %v643_v8 = vmul.f32 %v631_v4, %v631_v4  ;;  %v647_v17 = vsub.f32 %v621_v50, %v631_v4  ;;  %v836_v50 = vld [vmem:[%s1951_s8 + $0x108] sm:$0xff]  ;;  %v818_v4 = vld [vmem:[%s1951_s8 + $0x78] sm:$0xff] }
 0x2dd   : > { %v639_v7 = vpop.xlane.xlu1 %638  ;;  %877 = vmatpush1.msra.mxu1 %v836_v50  ;;  %v816_v5 = vld [vmem:[%s1951_s8 + $0x68] sm:$0xff] }
 0x2de   : > { %v641_v9 = vmul.f32 0.015625, %v639_v7  ;;  %v642_v11 = vmul.f32 %v630_v6, %v630_v6  ;;  %v646_v19 = vsub.f32 %v620_v52, %v630_v6  ;;  %v841_v52 = vld [vmem:[%s1951_s8 + $0x130] sm:$0xff]  ;;  %878 = vmatprep.subr.mxu1 %v834_v51  ;;  %v823_v6 = vld [vmem:[%s1951_s8 + $0xa0] sm:$0xff] }
 0x2df   : > { %v636_v10 = vpop.xlane.xlu0 %635  ;;  %879 = vmatpush1.msra.mxu1 %v833_v53  ;;  %v815_v7 = vld [vmem:[%s1951_s8 + $0x60] sm:$0xff] }
 0x2e0   : > { %v645_v12 = vsub.f32 %v641_v9, %v643_v8  ;;  %v640_v13 = vmul.f32 0.015625, %v636_v10  ;;  %880 = vmatprep.subr.mxu1 %v831_v54  ;;  %v813_v8 = vld [vmem:[%s1951_s8 + $0x50] sm:$0xff]  ;;  %v820_v9 = vld [vmem:[%s1951_s8 + $0x88] sm:$0xff]  ;;  %v853_v54 = vlaneseq }
 0x2e1   : > { %881 = vmatpush1.msra.mxu1 %v830_v56  ;;  %v812_v10 = vld [vmem:[%s1951_s8 + $0x48] sm:$0xff] }
 0x2e2   : > { %v649_v14 = vadd.f32 1e-05, %v645_v12  ;;  %v644_v15 = vsub.f32 %v640_v13, %v642_v11  ;;  %882 = vmatprep.subr.mxu1 %v828_v57  ;;  %v810_v11 = vld [vmem:[%s1951_s8 + $0x38] sm:$0xff]  ;;  %v817_v12 = vld [vmem:[%s1951_s8 + $0x70] sm:$0xff] }
 0x2e3   : > { %883 = vmatpush1.msra.mxu1 %v827_v59  ;;  %v809_v13 = vld [vmem:[%s1951_s8 + $0x30] sm:$0xff] }
 0x2e4   : > { %1413 = vrsqrt.f32 %v649_v14  ;;  %v648_v16 = vadd.f32 1e-05, %v644_v15  ;;  %884 = vmatprep.subr.mxu1 %v825_v60  ;;  %v807_v14 = vld [vmem:[%s1951_s8 + $0x20] sm:$0xff]  ;;  %v814_v15 = vld [vmem:[%s1951_s8 + $0x58] sm:$0xff] }
 0x2e5   : > { %885 = vmatpush1.msra.mxu1 %v824_v62 }
 0x2e6   : > { %1415 = vrsqrt.f32 %v648_v16  ;;  %886 = vmatprep.subr.mxu1 %v822_v63  ;;  %v806_v16 = vld [vmem:[%s1951_s8 + $0x18] sm:$0xff] }
 0x2e7   : > { %887 = vmatpush1.msra.mxu1 %v821_v1 }
 0x2e8   : > { %888 = vmatprep.subr.mxu1 %v819_v2 }
 0x2e9   : > { %889 = vmatpush1.msra.mxu1 %v818_v4 }
 0x2ea   : > { %890 = vmatprep.subr.mxu1 %v816_v5 }
 0x2eb   : > { %891 = vmatpush1.msra.mxu1 %v815_v7 }
 0x2ec   : > { %892 = vmatprep.subr.mxu1 %v813_v8 }
 0x2ed   : > { %893 = vmatpush1.msra.mxu1 %v812_v10 }
 0x2ee   : > { %894 = vmatprep.subr.mxu1 %v810_v11 }
 0x2ef   : > { %895 = vmatpush1.msra.mxu1 %v809_v13 }
 0x2f0   : > { %896 = vmatprep.subr.mxu1 %v807_v14 }
 0x2f1   : > { %v1414_v18 = vpop.eup %1413  ;;  %897 = vmatpush1.msra.mxu1 %v806_v16 }
 0x2f2   : > { %v653_v21 = vmul.f32 %v1414_v18, %v647_v17  ;;  %v804_v17 = vld [vmem:[%s1951_s8 + $0x8] sm:$0xff]  ;;  %v811_v18 = vld [vmem:[%s1951_s8 + $0x40] sm:$0xff] }
 0x2f3   : > { %v1416_v22 = vpop.eup %1415  ;;  %898 = vmatprep.subr.mxu1 %v804_v17 }
 0x2f4   : > { %v652_v23 = vmul.f32 %v1416_v22, %v646_v19  ;;  %v659_v24 = vmul.f32 %v1242_v20, %v653_v21  ;;  %v803_v19 = vld [vmem:[%s1951_s8] sm:$0xff]  ;;  %v808_v21 = vld [vmem:[%s1951_s8 + $0x28] sm:$0xff]  ;;  %v805_v22 = vld [vmem:[%s1951_s8 + $0x10] sm:$0xff] }
 0x2f5   : > { %899 = vmatpush1.msra.mxu1 %v803_v19 }
 0x2f6   : > { %v658_v26 = vmul.f32 %v1242_v20, %v652_v23  ;;  %v665_v28 = vadd.f32 %v1243_v25, %v659_v24  ;;  %v1499_v20 = vmov 0.0   ;;  %v1081_v23 = vld [vmem:[%s383_s29 + $0x8] sm:$0xff]  ;;  %v1080_v24 = vld [vmem:[%s383_s29] sm:$0xff] }
 0x2f7   : > { %932 = vmatprep.mubr.f32.mxu1 %v1499_v20 }
 0x2f8   : > { %v664_v27 = vadd.f32 %v1243_v25, %v658_v26  ;;  %v1082_v25 = vld [vmem:[%s383_s29 + $0x10] sm:$0xff]  ;;  %v1083_v26 = vld [vmem:[%s383_s29 + $0x18] sm:$0xff]  ;;  %s371_s29 = scalar_lea.vmem [#allocation2], %s1227_s28 }
 0x2fa   : > { %1327 = vmatprep.mubr.msk.f32.mxu0 %vm622_vm3, %v664_v27 }
 0x2fb   : > { %1328 = vmatmul.mubr.msk.f32.vlgmr.msra.gmra.mxu0 %vm622_vm3, %v665_v28 }
 0x2fc   : > { %1331 = vmatpush3.msra.mxu0 %v850_v43 }
 0x2fd   : > { %1332 = vmatprep.subr.mxu0 %v847_v46 }
 0x2fe   : > { %1333 = vmatpush3.msra.mxu0 %v847_v46 }
 0x2ff   : > { %1334 = vmatprep.subr.mxu0 %v844_v49 }
 0x300   : > { %1335 = vmatpush3.msra.mxu0 %v844_v49 }
 0x301   : > { %1336 = vmatprep.subr.mxu0 %v841_v52 }
 0x302   : > { %1337 = vmatpush3.msra.mxu0 %v841_v52 }
 0x303   : > { %1338 = vmatprep.subr.mxu0 %v838_v55 }
 0x304   : > { %1339 = vmatpush3.msra.mxu0 %v838_v55  ;;  %v1853_v55 = vshrl.u32 %v853_v54, 7 }
 0x305   : > { %1340 = vmatprep.subr.mxu0 %v835_v58 }
 0x306   : > { %1341 = vmatpush3.msra.mxu0 %v835_v58  ;;  %v859_v56 = vsub.s32 1, %v1853_v55  ;;  %v863_v57 = vsub.s32 2, %v1853_v55 }
 0x307   : > { %1342 = vmatprep.subr.mxu0 %v832_v61 }
 0x308   : > { %1343 = vmatpush3.msra.mxu0 %v832_v61 }
 0x309   : > { %1344 = vmatprep.subr.mxu0 %v829_v0 }
 0x30a   : > { %1345 = vmatpush3.msra.mxu0 %v829_v0 }
 0x30b   : > { %1346 = vmatprep.subr.mxu0 %v826_v3 }
 0x30c   : > { %1347 = vmatpush3.msra.mxu0 %v826_v3 }
 0x30d   : > { %1348 = vmatprep.subr.mxu0 %v823_v6 }
 0x30e   : > { %1349 = vmatpush3.msra.mxu0 %v823_v6 }
 0x30f   : > { %1350 = vmatprep.subr.mxu0 %v820_v9 }
 0x310   : > { %1351 = vmatpush3.msra.mxu0 %v820_v9 }
 0x311   : > { %1352 = vmatprep.subr.mxu0 %v817_v12 }
 0x312   : > { %1353 = vmatpush3.msra.mxu0 %v817_v12 }
 0x313   : > { %1354 = vmatprep.subr.mxu0 %v814_v15 }
 0x314   : > { %1355 = vmatpush3.msra.mxu0 %v814_v15 }
 0x315   : > { %1356 = vmatprep.subr.mxu0 %v811_v18 }
 0x316   : > { %1357 = vmatpush3.msra.mxu0 %v811_v18 }
 0x317   : > { %1358 = vmatprep.subr.mxu0 %v808_v21 }
 0x318   : > { %1359 = vmatpush3.msra.mxu0 %v808_v21 }
 0x319   : > { %1360 = vmatprep.subr.mxu0 %v805_v22 }
 0x31a   : > { %1361 = vmatpush3.msra.mxu0 %v805_v22 }
 0x3bb   : > { %v1329_v33 = vpop.f32.mrf.mxu0 }
 0x3bc   : > { %v759_v36 = vadd.f32 %v1329_v33, %v1244_v34 }
 0x3bd   : > { %v753_v35 = vpop.f32.mrf.mxu0 }
 0x3be   : > { %v754_v37 = vadd.f32 %v1244_v34, %v753_v35  ;;  %v1701_v39 = vmax.f32 %v759_v36, 0.0 }
 0x3c0   : > { %v1699_v38 = vmax.f32 %v754_v37, 0.0  ;;  %v772_v41 = vmul.f32 %v1701_v39, %v1701_v39 }
 0x3c2   : > { %764 = vadd.xlane.f32.xlu0 %v1699_v38  ;;  %v771_v40 = vmul.f32 %v1699_v38, %v1699_v38 }
 0x3c4   : > { %773 = vadd.xlane.f32.xlu1 %v771_v40 }
 0x3c6   : > { %766 = vadd.xlane.f32.xlu0 %v1701_v39 }
 0x3c8   : > { %775 = vadd.xlane.f32.xlu1 %v772_v41 }
 0x3d9   : > { %1090 = vrot.lane.b32.xlu1 %v1081_v23, %s1500_s30 }
 0x3dc   : > { %1088 = vrot.lane.b32.xlu0 %v1080_v24, %s1500_s30 }
 0x3dd   : > { %1092 = vrot.lane.b32.xlu1 %v1082_v25, %s1500_s30 }
 0x3e1   : > { %1094 = vrot.lane.b32.xlu1 %v1083_v26, %s1500_s30  ;;  %s1149_s30 = sshll.u32 %s371_s29, 4  ;;  %s1894_s30 = int_to_ptr.vmem [resolvable:$true] %s1149_s30 }
 0x3e2   : > { %s1437_s20 = scalar_lea.vmem %s1894_s30, 512 }
 0x3e3   : > { %p1438_p11 = scmp.ne.s32.totalorder %s1894_s30, %s1437_s20 }
 0x3e5   : > { %p1439_p12 = pnand %p1438_p11, %p1598_p5 }
 0x3e7   : > { %p1440_p13 = pneg %p1439_p12 }
 0x44b   : > { %v765_v27 = vpop.xlane.xlu0 %764 }
 0x44c   : > { %v769_v28 = vmul.f32 0.0078125, %v765_v27 }
 0x44d   : > { %v774_v29 = vpop.xlane.xlu1 %773 }
 0x44e   : > { %v779_v30 = vmul.f32 %v769_v28, %v769_v28  ;;  %v777_v31 = vmul.f32 0.0078125, %v774_v29  ;;  %v783_v43 = vsub.f32 %v1699_v38, %v769_v28 }
 0x44f   : > { %v767_v32 = vpop.xlane.xlu0 %766 }
 0x450   : > { %v781_v33 = vsub.f32 %v777_v31, %v779_v30  ;;  %v770_v34 = vmul.f32 0.0078125, %v767_v32 }
 0x451   : > { %v776_v35 = vpop.xlane.xlu1 %775 }
 0x452   : > { %v785_v36 = vadd.f32 1e-05, %v781_v33  ;;  %v780_v37 = vmul.f32 %v770_v34, %v770_v34  ;;  %v778_v40 = vmul.f32 0.0078125, %v776_v35  ;;  %v784_v48 = vsub.f32 %v1701_v39, %v770_v34  ;;  %v1860_v39 = vld [vmem:[%s1952_s9] sm:$0x7] }
 0x453   : > { %v860_v58 = vrot.slane %v1860_v39, %v859_v56  ;;  %v864_v60 = vrot.slane %v1860_v39, %v863_v57 }
 0x454   : > { %1417 = vrsqrt.f32 %v785_v36  ;;  %v782_v41 = vsub.f32 %v778_v40, %v780_v37 }
 0x455   : > { %v1091_v28 = vpop.permute.xlu1 %1090 }
 0x456   : > { %v786_v42 = vadd.f32 1e-05, %v782_v41 }
 0x458   : > { %1419 = vrsqrt.f32 %v786_v42 }
 0x461   : > { %v1418_v44 = vpop.eup %1417 }
 0x462   : > { %v789_v46 = vmul.f32 %v1418_v44, %v783_v43 }
 0x464   : > { %v795_v49 = vmul.f32 %v1247_v45, %v789_v46  ;;  %v1093_v46 = vpop.permute.xlu1 %1092 }
 0x465   : > { %v1420_v50 = vpop.eup %1419 }
 0x466   : > { %v801_v51 = vadd.f32 %v1248_v47, %v795_v49  ;;  %v790_v52 = vmul.f32 %v1420_v50, %v784_v48 }
 0x468   : > { %933 = vmatmul.mubr.f32.vlgmr.msra.gmra.mxu1 %v801_v51  ;;  %1362 = vmatprep.mubr.f32.mxu0 %v801_v51  ;;  %v796_v53 = vmul.f32 %v1247_v45, %v790_v52 }
 0x469   : > { %938 = vmatprep.mubr.f32.mxu1 %v1499_v20 }
 0x46a   : > { %v802_v38 = vadd.f32 %v1248_v47, %v796_v53  ;;  %v1089_v47 = vpop.permute.xlu0 %1088 }
 0x46c   : > { %939 = vmatmul.mubr.f32.gmra.mxu1 %v802_v38  ;;  %1363 = vmatmul.mubr.f32.vlgmr.msra.gmra.mxu0 %v802_v38 }
 0x528   : > { %v1863_v59 = vpop.f32.mrf.mxu1 }
 0x52a   : > { %v936_v61 = vpop.f32.mrf.mxu1 }
 0x52b   : > { %v1866_v62 = vadd.f32 %v936_v61, %v860_v58 }
 0x52c   : > { %v1868_v63 = vpop.f32.mrf.mxu1  ;;  %v1364_v0 = vpop.f32.mrf.mxu0 }
 0x52d   : > { %v1024_v1 = vand.u32 2147483647, %v1866_v62  ;;  %v1871_v2 = vadd.f32 %v1364_v0, %v864_v60  ;;  %v1020_v41 = vmax.f32 %v1866_v62, 0.0 }
 0x52e   : > { %v942_v3 = vpop.f32.mrf.mxu1  ;;  %v1011_v4 = vpop.f32.mrf.mxu0 }
 0x52f   : > { %v1028_v5 = vsub.f32 0.0, %v1024_v1  ;;  %v1027_v6 = vand.u32 2147483647, %v1871_v2  ;;  %v1874_v7 = vadd.f32 %v942_v3, %v860_v58  ;;  %v1876_v8 = vadd.f32 %v1011_v4, %v864_v60 }
 0x531   : > { %v1032_v9 = vmul.f32 1.442695, %v1028_v5  ;;  %v1031_v10 = vsub.f32 0.0, %v1027_v6  ;;  %v1026_v11 = vand.u32 2147483647, %v1874_v7  ;;  %v1022_v38 = vmax.f32 %v1874_v7, 0.0 }
 0x532   : > { %v1025_v12 = vand.u32 2147483647, %v1876_v8  ;;  %v1021_v61 = vmax.f32 %v1876_v8, 0.0  ;;  %v1023_v5 = vmax.f32 %v1871_v2, 0.0 }
 0x533   : > { %1421 = vpow2.f32 %v1032_v9  ;;  %v1038_v13 = vmul.f32 1.442695, %v1031_v10  ;;  %v1030_v14 = vsub.f32 0.0, %v1026_v11  ;;  %v1095_v9 = vpop.permute.xlu1 %1094  ;;  %v1097_v11 = vsel %vm1096_vm5, %v1089_v47, %v1091_v28 }
 0x534   : > { %v1029_v15 = vsub.f32 0.0, %v1025_v12 }
 0x535   : > { %1423 = vpow2.f32 %v1038_v13  ;;  %v1036_v16 = vmul.f32 1.442695, %v1030_v14  ;;  %v1098_v14 = vsel %vm1096_vm5, %v1093_v46, %v1095_v9 }
 0x536   : > { %v1034_v17 = vmul.f32 1.442695, %v1029_v15  ;;  %v855_v15 = vsub.s32 0, %v1853_v55 }
 0x537   : > { %1425 = vpow2.f32 %v1036_v16 }
 0x538   : > { %1427 = vpow2.f32 %v1034_v17  ;;  %v856_v16 = vrot.slane %v1860_v39, %v855_v15 }
 0x53a   : > { %v935_v17 = vadd.f32 %v1863_v59, %v856_v16  ;;  %v941_v55 = vadd.f32 %v1868_v63, %v856_v16 }
 0x540   : > { %v1422_v18 = vpop.eup %1421 }
 0x541   : > { %v1040_v19 = vadd.f32 1.0, %v1422_v18  ;;  %v1043_v26 = vmul.f32 -0.5, %v1422_v18  ;;  %v1046_v32 = vand.u32 2147483647, %v1422_v18 }
 0x542   : > { %v1424_v20 = vpop.eup %1423 }
 0x543   : > { %v1067_v21 = vadd.f32 1.0, %v1424_v20  ;;  %1429 = vlog2.f32 %v1040_v19  ;;  %v1070_v27 = vmul.f32 -0.5, %v1424_v20  ;;  %v1044_v30 = vadd.f32 1.0, %v1043_v26 }
 0x544   : > { %v1426_v22 = vpop.eup %1425  ;;  %vm1047_vm4 = vcmp.lt.f32.partialorder %v1046_v32, 0.0004427343  ;;  %v1073_v44 = vand.u32 2147483647, %v1424_v20 }
 0x545   : > { %v1428_v23 = vpop.eup %1427  ;;  %1431 = vlog2.f32 %v1067_v21  ;;  %v1058_v24 = vadd.f32 1.0, %v1426_v22  ;;  %v1061_v29 = vmul.f32 -0.5, %v1426_v22  ;;  %v1071_v34 = vadd.f32 1.0, %v1070_v27 }
 0x546   : > { %v1049_v25 = vadd.f32 1.0, %v1428_v23  ;;  %v1052_v31 = vmul.f32 -0.5, %v1428_v23  ;;  %v1045_v37 = vmul.f32 %v1422_v18, %v1044_v30  ;;  %v1064_v43 = vand.u32 2147483647, %v1426_v22 }
 0x547   : > { %1433 = vlog2.f32 %v1058_v24  ;;  %v1062_v35 = vadd.f32 1.0, %v1061_v29  ;;  %v1055_v45 = vand.u32 2147483647, %v1428_v23  ;;  %v1072_v53 = vmul.f32 %v1424_v20, %v1071_v34 }
 0x548   : > { %1435 = vlog2.f32 %v1049_v25  ;;  %v1053_v42 = vadd.f32 1.0, %v1052_v31  ;;  %vm1065_vm6 = vcmp.lt.f32.partialorder %v1064_v43, 0.0004427343  ;;  %vm1074_vm7 = vcmp.lt.f32.partialorder %v1073_v44, 0.0004427343 }
 0x549   : > { %v1063_v56 = vmul.f32 %v1426_v22, %v1062_v35  ;;  %vm1056_vm8 = vcmp.lt.f32.partialorder %v1055_v45, 0.0004427343 }
 0x54a   : > { %v1054_v58 = vmul.f32 %v1428_v23, %v1053_v42 }
 0x550   : > { %v1430_v33 = vpop.eup %1429 }
 0x551   : > { %v1042_v36 = vmul.f32 0.6931472, %v1430_v33 }
 0x552   : > { %v1432_v40 = vpop.eup %1431 }
 0x553   : > { %v1048_v48 = vsel %vm1047_vm4, %v1045_v37, %v1042_v36  ;;  %v1069_v50 = vmul.f32 0.6931472, %v1432_v40 }
 0x554   : > { %v1434_v49 = vpop.eup %1433  ;;  %v1076_v51 = vadd.f32 %v1048_v48, %v1020_v41 }
 0x555   : > { %v1436_v52 = vpop.eup %1435  ;;  %v1060_v54 = vmul.f32 0.6931472, %v1434_v49  ;;  %v1075_v1 = vsel %vm1074_vm7, %v1072_v53, %v1069_v50 }
 0x556   : > { %v1051_v57 = vmul.f32 0.6931472, %v1436_v52  ;;  %v1103_v60 = vmul.f32 %v1089_v47, %v1076_v51  ;;  %v1079_v12 = vadd.f32 %v1075_v1, %v1023_v5 }
 0x557   : > { %v1066_v0 = vsel %vm1065_vm6, %v1063_v56, %v1060_v54 }
 0x558   : > { %v1057_v3 = vsel %vm1056_vm8, %v1054_v58, %v1051_v57  ;;  %v1078_v4 = vadd.f32 %v1066_v0, %v1022_v38  ;;  %1111 = vrot.lane.b32.xlu0 %v1103_v60, %s1501_s25  ;;  %v1106_v8 = vmul.f32 %v1098_v14, %v1079_v12 }
 0x559   : > { %v1077_v6 = vadd.f32 %v1057_v3, %v1021_v61 }
 0x55a   : > { %v1105_v10 = vmul.f32 %v1093_v46, %v1078_v4 }
 0x55b   : > { %v1104_v13 = vmul.f32 %v1097_v11, %v1077_v6 }
 0x55c   : > { %1115 = vrot.lane.b32.xlu0 %v1105_v10, %s1501_s25 }
 0x55d   : > { %1113 = vrot.lane.b32.xlu1 %v1104_v13, %s1501_s25 }
 0x561   : > { %1117 = vrot.lane.b32.xlu1 %v1106_v8, %s1501_s25  ;;  %s1441_s25 = sshll.u32 %s1502_s21, 4  ;;  %s1442_s25 = int_to_ptr.vmem [resolvable:$false] %s1441_s25 }
 0x562   : > { %s1443_s28 = scalar_lea.vmem %s1442_s25, 1024  ;;  %p1444_p0 = scmp.lt.s32.totalorder %s1894_s30, %s1442_s25 }
 0x563   : > { %p1445_p1 = scmp.lt.s32.totalorder %s1443_s28, %s1437_s20 }
 0x565   : > { %p1446_p2 = por %p1445_p1, %p1444_p0 }
 0x567   : > { %p1447_p3 = pnand %p1446_p2, %p1440_p13 }
 0x5ca   : > { %v1112_v2 = vpop.permute.xlu0 %1111 }
 0x5ce   : > { %v1116_v22 = vpop.permute.xlu0 %1115 }
 0x5cf   : > { %v1114_v18 = vpop.permute.xlu1 %1113 }
 0x5d0   : > { %v1120_v19 = vsel %vm1119_vm9, %v1112_v2, %v1114_v18  ;;  %v1127_v20 = vadd.f32 %v1114_v18, %v1866_v62 }
 0x5d1   : > { %v1126_v21 = vadd.f32 %v1120_v19, %v935_v17 }
 0x5d2   : > { %1131 = vst.msk [vmem:[%s371_s29 + $0x8] sm:$0xff] %vm1096_vm5, %v1127_v20 }
 0x5d3   : > { %1130 = vst [vmem:[%s371_s29] sm:$0xff] %v1126_v21  ;;  %v1118_v39 = vpop.permute.xlu1 %1117 }
 0x5d4   : > { %v1121_v59 = vsel %vm1119_vm9, %v1116_v22, %v1118_v39  ;;  %v1129_v62 = vadd.f32 %v1118_v39, %v1874_v7 }
 0x5d5   : > { %v1128_v23 = vadd.f32 %v1121_v59, %v941_v55 }
 0x5d6   : > { %1133 = vst.msk [vmem:[%s371_s29 + $0x18] sm:$0xff] %vm1096_vm5, %v1129_v62 }
 0x5d7   : > { %1132 = vst [vmem:[%s371_s29 + $0x10] sm:$0xff] %v1128_v23 }
 0x5d8   : > { %1450 = shalt.err (!%p1447_p3)
}
 0x5d9   : > { %s1451_s26 = scalar_lea.hbm %s1900_s18, 512  ;;  %s1455_s11 = scalar_lea.hbm %s1953_s10, 2048 }
 0x5da   : > { %p1452_p4 = scmp.ne.s32.totalorder %s1900_s18, %s1451_s26  ;;  %p1456_p9 = scmp.lt.s32.totalorder %s1900_s18, %s1953_s10 }
 0x5db   : > { %p1457_p10 = scmp.lt.s32.totalorder %s1455_s11, %s1451_s26 }
 0x5dc   : > { %p1453_p7 = pnand %p1452_p4, %p1598_p5 }
 0x5dd   : > { %p1458_p11 = por %p1457_p10, %p1456_p9 }
 0x5de   : > { %p1454_p8 = pneg %p1453_p7 }
 0x5e0   : > { %p1459_p12 = pnand %p1458_p11, %p1454_p8 }
 0x5e2   : > { %1462 = shalt.err (!%p1459_p12)
}
 0x5e3   : > { %s1503_s20 = smov 256   ;;  %s1504_s25 = smov 16  }
 0x5e4   : > { %1365 = dma.vmem_to_hbm [thread:$0]  (%p1598_p5), %s1894_s30, 512, %s1900_s18, %s1903_s17, %s1503_s20, %s1503_s20, %s1504_s25  }
 0x5e5 PF: > { %p1371_p13 = scmp.ge.s32.totalorder %s1497_s16, 2  ;;  %s1164_s28 = sand.u32 1, %s1485_s13  }
 0x5e6   : > { %s1165_s26 = scalar_lea.sflag [#allocation3], %s1164_s28 }
 0x5e7   : > { %p1368_p0 = pnand %p1371_p13, %p1602_p6 }
 0x5e9   : > { %p1369_p1 = pneg %p1368_p0 }
 0x5eb   : > { %1480 = dma.done.wait (%p1369_p1), %s1165_s26, 512  }
 0x5ec   : > { %1482 = vsyncadd (%p1369_p1), %s1165_s26, 4294966784  ;;  %p20_p2 = scmp.ge.s32.totalorder %s1585_s19, 6   ;;  %s1956_s13 = smov %s1489_s14 }
 0x5ed   : > { %s1957_s14 = smov %s1493_s15  ;;  %s1958_s15 = smov %s1596_s22 }
 0x5ee   : > { %s1959_s16 = smov %s1585_s19  ;;  %22 = sbr.rel (!%p20_p2) target bundleno = 3 (0x3), region = 98 }
 0x5f3   :  { %1170 = vsyncpa [#allocation3], 1 }
 0x5f4   :  { %1172 = vsyncpa [#allocation3 + $0x1], 1 }

</bundles_post_ra>
